<compile_context>
chip_gen: v7x
topology: tpu7x:2x2x1
jax: 0.10.0
libtpu: 0.0.40
codegen_flags: <defaults>
</compile_context>

<pallas_src>
import functools

import jax
import jax.numpy as jnp
from jax.experimental import pallas as pl
from jax.experimental.pallas import tpu as pltpu


def _pick_time_tile(T, C_in, C_out, pad, itemsize):
    """Largest lane-aligned time tile that divides T and keeps the
    double-buffered in/out tiles + window scratch well under VMEM
    (budget chosen for v7x's 64 MiB physical / 32 MiB scoped VMEM)."""
    budget = 8 * 1024 * 1024
    for tT in (2048, 1024, 512, 256, 128):
        if T % tT:
            continue
        vmem = itemsize * (2 * C_in * tT + 2 * C_out * tT + C_in * (tT + pad))
        if vmem <= budget:
            return tT
    return T  # short / odd T: one whole-sequence tile (still time-on-lanes)


def _causal_conv1d_kernel(x_ref, w_ref, b_ref, o_ref, xw_ref, *,
                          tT, K, dilation, pad, use_mxu):
    """One (batch, time-tile) grid step.

    x_ref : (1, C_in, tT)     current input tile (time on lanes)
    w_ref : (C_out, K*C_in)   weights, column index = k*C_in + c
    b_ref : (C_out, 1)        bias
    o_ref : (1, C_out, tT)    output tile
    xw_ref: (C_in, tT + pad)  persistent window scratch: [causal halo | tile]
    """
    C_in = x_ref.shape[1]
    C_out = o_ref.shape[1]
    j = pl.program_id(1)

    # Causal left boundary: zero the halo at the first time tile of each batch.
    @pl.when(j == 0)
    def _():
        xw_ref[:, :pad] = jnp.zeros((C_in, pad), dtype=xw_ref.dtype)

    # Assemble the shifted window: xw = [x[.., jt-pad : jt] | x[.., jt : jt+tT]].
    xw_ref[:, pad:] = x_ref[0]

    if use_mxu:
        # All K taps fused into one matmul: contraction = K*C_in, lanes = time.
        x_taps = jnp.concatenate(
            [xw_ref[:, k * dilation:k * dilation + tT] for k in range(K)],
            axis=0)                                              # (K*C_in, tT)
        acc = jnp.dot(w_ref[...], x_taps,
                      preferred_element_type=jnp.float32)        # (C_out, tT)
        acc = acc + b_ref[...]
    else:
        # Tiny channels: the MXU would be <1% full, so do K*C_in broadcast
        # FMAs on the VPU.  Accumulator starts from the broadcast bias.
        acc = jnp.broadcast_to(b_ref[...], (C_out, tT)).astype(jnp.float32)
        for k in range(K):
            for c in range(C_in):
                col = w_ref[:, k * C_in + c:k * C_in + c + 1]            # (C_out, 1)
                row = xw_ref[c:c + 1, k * dilation:k * dilation + tT]    # (1, tT)
                acc = acc + col * row
    o_ref[0] = acc.astype(o_ref.dtype)

    # Roll the window: last `pad` stream columns become the next tile's halo.
    xw_ref[:, :pad] = xw_ref[:, tT:]


def causal_conv1d(x, weight, bias=None, *, dilation=1, stride=1, time_tile=None):
    """x: (N, C_in, T); weight: (C_out, C_in, K) (PyTorch Conv1d layout);
    bias: (C_out,) or None.  Returns (N, C_out, T)."""
    # TODO(synk): stride != 1 has no clean causal-truncation semantics in the
    # reference module; only the WaveNet case (stride == 1) is implemented.
    assert stride == 1
    N, C_in, T = x.shape
    C_out, _, K = weight.shape
    pad = (K - 1) * dilation
    assert pad >= 1, "kernel_size=1 degenerates in the reference ([..., :-0])"

    tT = time_tile if time_tile is not None else _pick_time_tile(
        T, C_in, C_out, pad, x.dtype.itemsize)
    assert T % tT == 0
    nT = T // tT

    # Tiny, activation-free weight prep: (C_out, C_in, K) -> (C_out, K*C_in)
    # with column index k*C_in + c, matching the tap stacking in the kernel.
    w2d = jnp.transpose(weight, (0, 2, 1)).reshape(C_out, K * C_in)
    if bias is None:
        bias = jnp.zeros((C_out,), dtype=weight.dtype)
    b2d = bias.astype(jnp.float32).reshape(C_out, 1)

    # MXU only pays off once both the contraction (K*C_in) and C_out are
    # sizeable; otherwise stay on the VPU (no matmul push/pop latency).
    use_mxu = min(K * C_in, C_out) >= 64

    kernel = functools.partial(_causal_conv1d_kernel, tT=tT, K=K,
                               dilation=dilation, pad=pad, use_mxu=use_mxu)

    return pl.pallas_call(
        kernel,
        out_shape=jax.ShapeDtypeStruct((N, C_out, T), x.dtype),
        grid_spec=pltpu.PrefetchScalarGridSpec(
            num_scalar_prefetch=0,
            grid=(N, nT),
            in_specs=[
                pl.BlockSpec((1, C_in, tT), lambda n, j: (n, 0, j)),
                pl.BlockSpec((C_out, K * C_in), lambda n, j: (0, 0)),
                pl.BlockSpec((C_out, 1), lambda n, j: (0, 0)),
            ],
            out_specs=pl.BlockSpec((1, C_out, tT), lambda n, j: (n, 0, j)),
            scratch_shapes=[pltpu.VMEM((C_in, tT + pad), x.dtype)],
        ),
        compiler_params=pltpu.CompilerParams(
            # Batch tiles are independent (megacore-shardable on v7x); the time
            # axis carries the causal halo in scratch, so it stays sequential.
            dimension_semantics=("parallel", "arbitrary")),
    )(x, w2d, b2d)


def _reference(x, weight, bias, *, dilation=1):
    """Pure-JAX reference of the same causal conv (f32, high precision)."""
    N, C_in, T = x.shape
    C_out, _, K = weight.shape
    pad = (K - 1) * dilation
    xp = jnp.pad(x, ((0, 0), (0, 0), (pad, 0)))
    out = jnp.zeros((N, C_out, T), jnp.float32)
    for k in range(K):
        x_k = xp[:, :, k * dilation:k * dilation + T]
        out = out + jnp.einsum("nct,oc->not", x_k, weight[:, :, k],
                               precision=jax.lax.Precision.HIGHEST)
    return (out + bias[None, :, None]).astype(x.dtype)


if __name__ == "__main__":
    key = jax.random.PRNGKey(0)

    def _make(k, N, C_in, C_out, T, K):
        k_x, k_w, k_b = jax.random.split(k, 3)
        x = jax.random.normal(k_x, (N, C_in, T), dtype=jnp.float32)
        bound = 1.0 / ((C_in * K) ** 0.5)  # nn.Conv1d default init range
        w = jax.random.uniform(k_w, (C_out, C_in, K), minval=-bound,
                               maxval=bound, dtype=jnp.float32)
        b = jax.random.uniform(k_b, (C_out,), minval=-bound, maxval=bound,
                               dtype=jnp.float32)
        return x, w, b

    # 1) Module-sized case: batch=2, channels=4, T=16, K=2, dil=1 (VPU path).
    x, w, b = _make(jax.random.fold_in(key, 0), N=2, C_in=4, C_out=4, T=16, K=2)
    out = jax.block_until_ready(causal_conv1d(x, w, b, dilation=1))
    assert out.shape == (2, 4, 16)
    assert jnp.allclose(out, _reference(x, w, b, dilation=1),
                        atol=1e-5, rtol=1e-5)

    # 2) Time-tiled, dilated case: exercises the rolling causal halo across tiles.
    x, w, b = _make(jax.random.fold_in(key, 1), N=2, C_in=8, C_out=8, T=512, K=2)
    out = jax.block_until_ready(causal_conv1d(x, w, b, dilation=3, time_tile=128))
    assert jnp.allclose(out, _reference(x, w, b, dilation=3),
                        atol=1e-4, rtol=1e-4)

    # 3) Wide-channel case: exercises the fused-tap MXU path.  Loose tolerance:
    #    the in-kernel f32 dot may use reduced-precision MXU passes.
    x, w, b = _make(jax.random.fold_in(key, 2), N=1, C_in=64, C_out=64, T=512, K=2)
    out = jax.block_until_ready(causal_conv1d(x, w, b, dilation=2, time_tile=256))
    assert jnp.allclose(out, _reference(x, w, b, dilation=2),
                        atol=1e-2, rtol=1e-2)

    print("KERNEL_OK")
</pallas_src>

<mosaic_0001>
module attributes {stable_mosaic.version = 11 : i64} {
  func.func @_causal_conv1d_kernel(%arg0: i32, %arg1: i32, %arg2: memref<1x4x16xf32, #tpu.memory_space<vmem>>, %arg3: memref<4x8xf32, #tpu.memory_space<vmem>>, %arg4: memref<4x1xf32, #tpu.memory_space<vmem>>, %arg5: memref<1x4x16xf32, #tpu.memory_space<vmem>>, %arg6: memref<4x17xf32, #tpu.memory_space<vmem>>) attributes {dimension_semantics = [#tpu.dimension_semantics<parallel>, #tpu.dimension_semantics<arbitrary>], iteration_bounds = array<i64: 2, 1>, scalar_prefetch = 0 : i64, scratch_operands = 1 : i64, tpu.core_type = #tpu.core_type<tc>, window_params = [{transform_indices = @transform_0, window_bounds = array<i64: 1, 4, 16>}, {pipeline_mode = #tpu.pipeline_mode<synchronous>, transform_indices = @transform_1, window_bounds = array<i64: 4, 8>}, {pipeline_mode = #tpu.pipeline_mode<synchronous>, transform_indices = @transform_2, window_bounds = array<i64: 4, 1>}, {transform_indices = @transform_3, window_bounds = array<i64: 1, 4, 16>}]} {
    %c0_i32 = arith.constant 0 : i32
    %0 = arith.cmpi eq, %arg1, %c0_i32 : i32
    %1 = arith.extui %0 : i1 to i32
    %c0_i32_0 = arith.constant 0 : i32
    %2 = arith.cmpi ne, %1, %c0_i32_0 : i32
    scf.if %2 {
      %cst = arith.constant 0.000000e+00 : f32
      %62 = vector.broadcast %cst : f32 to vector<4x1xf32>
      %c0_38 = arith.constant 0 : index
      %c0_39 = arith.constant 0 : index
      %63 = vector.load %arg6[%c0_38, %c0_39] : memref<4x17xf32, #tpu.memory_space<vmem>>, vector<4x1xf32>
      tpu.vector_store %arg6[%c0_38, %c0_39], %62 {strides = array<i32>} : memref<4x17xf32, #tpu.memory_space<vmem>>, vector<4x1xf32>,
    } else {
    }
    %c0 = arith.constant 0 : index
    %c0_1 = arith.constant 0 : index
    %c0_2 = arith.constant 0 : index
    %3 = vector.load %arg2[%c0, %c0_1, %c0_2] : memref<1x4x16xf32, #tpu.memory_space<vmem>>, vector<1x4x16xf32>
    %4 = vector.shape_cast %3 : vector<1x4x16xf32> to vector<4x16xf32>
    %c0_3 = arith.constant 0 : index
    %c1 = arith.constant 1 : index
    %5 = vector.load %arg6[%c0_3, %c1] : memref<4x17xf32, #tpu.memory_space<vmem>>, vector<4x16xf32>
    tpu.vector_store %arg6[%c0_3, %c1], %4 {strides = array<i32>} : memref<4x17xf32, #tpu.memory_space<vmem>>, vector<4x16xf32>,
    %c0_4 = arith.constant 0 : index
    %c0_5 = arith.constant 0 : index
    %6 = vector.load %arg4[%c0_4, %c0_5] : memref<4x1xf32, #tpu.memory_space<vmem>>, vector<4x1xf32>
    %7 = vector.shape_cast %6 : vector<4x1xf32> to vector<4x1xf32>
    %8 = vector.broadcast %7 : vector<4x1xf32> to vector<4x16xf32>
    %c0_6 = arith.constant 0 : index
    %c0_7 = arith.constant 0 : index
    %9 = vector.load %arg3[%c0_6, %c0_7] : memref<4x8xf32, #tpu.memory_space<vmem>>, vector<4x1xf32>
    %c0_8 = arith.constant 0 : index
    %c0_9 = arith.constant 0 : index
    %10 = vector.load %arg6[%c0_8, %c0_9] : memref<4x17xf32, #tpu.memory_space<vmem>>, vector<1x16xf32>
    %11 = vector.broadcast %9 : vector<4x1xf32> to vector<4x16xf32>
    %12 = vector.broadcast %10 : vector<1x16xf32> to vector<4x16xf32>
    %13 = arith.mulf %11, %12 : vector<4x16xf32>
    %14 = arith.addf %8, %13 : vector<4x16xf32>
    %c0_10 = arith.constant 0 : index
    %c1_11 = arith.constant 1 : index
    %15 = vector.load %arg3[%c0_10, %c1_11] : memref<4x8xf32, #tpu.memory_space<vmem>>, vector<4x1xf32>
    %c1_12 = arith.constant 1 : index
    %c0_13 = arith.constant 0 : index
    %16 = vector.load %arg6[%c1_12, %c0_13] : memref<4x17xf32, #tpu.memory_space<vmem>>, vector<1x16xf32>
    %17 = vector.broadcast %15 : vector<4x1xf32> to vector<4x16xf32>
    %18 = vector.broadcast %16 : vector<1x16xf32> to vector<4x16xf32>
    %19 = arith.mulf %17, %18 : vector<4x16xf32>
    %20 = arith.addf %14, %19 : vector<4x16xf32>
    %c0_14 = arith.constant 0 : index
    %c2 = arith.constant 2 : index
    %21 = vector.load %arg3[%c0_14, %c2] : memref<4x8xf32, #tpu.memory_space<vmem>>, vector<4x1xf32>
    %c2_15 = arith.constant 2 : index
    %c0_16 = arith.constant 0 : index
    %22 = vector.load %arg6[%c2_15, %c0_16] : memref<4x17xf32, #tpu.memory_space<vmem>>, vector<1x16xf32>
    %23 = vector.broadcast %21 : vector<4x1xf32> to vector<4x16xf32>
    %24 = vector.broadcast %22 : vector<1x16xf32> to vector<4x16xf32>
    %25 = arith.mulf %23, %24 : vector<4x16xf32>
    %26 = arith.addf %20, %25 : vector<4x16xf32>
    %c0_17 = arith.constant 0 : index
    %c3 = arith.constant 3 : index
    %27 = vector.load %arg3[%c0_17, %c3] : memref<4x8xf32, #tpu.memory_space<vmem>>, vector<4x1xf32>
    %c3_18 = arith.constant 3 : index
    %c0_19 = arith.constant 0 : index
    %28 = vector.load %arg6[%c3_18, %c0_19] : memref<4x17xf32, #tpu.memory_space<vmem>>, vector<1x16xf32>
    %29 = vector.broadcast %27 : vector<4x1xf32> to vector<4x16xf32>
    %30 = vector.broadcast %28 : vector<1x16xf32> to vector<4x16xf32>
    %31 = arith.mulf %29, %30 : vector<4x16xf32>
    %32 = arith.addf %26, %31 : vector<4x16xf32>
    %c0_20 = arith.constant 0 : index
    %c4 = arith.constant 4 : index
    %33 = vector.load %arg3[%c0_20, %c4] : memref<4x8xf32, #tpu.memory_space<vmem>>, vector<4x1xf32>
    %c0_21 = arith.constant 0 : index
    %c1_22 = arith.constant 1 : index
    %34 = vector.load %arg6[%c0_21, %c1_22] : memref<4x17xf32, #tpu.memory_space<vmem>>, vector<1x16xf32>
    %35 = vector.broadcast %33 : vector<4x1xf32> to vector<4x16xf32>
    %36 = vector.broadcast %34 : vector<1x16xf32> to vector<4x16xf32>
    %37 = arith.mulf %35, %36 : vector<4x16xf32>
    %38 = arith.addf %32, %37 : vector<4x16xf32>
    %c0_23 = arith.constant 0 : index
    %c5 = arith.constant 5 : index
    %39 = vector.load %arg3[%c0_23, %c5] : memref<4x8xf32, #tpu.memory_space<vmem>>, vector<4x1xf32>
    %c1_24 = arith.constant 1 : index
    %c1_25 = arith.constant 1 : index
    %40 = vector.load %arg6[%c1_24, %c1_25] : memref<4x17xf32, #tpu.memory_space<vmem>>, vector<1x16xf32>
    %41 = vector.broadcast %39 : vector<4x1xf32> to vector<4x16xf32>
    %42 = vector.broadcast %40 : vector<1x16xf32> to vector<4x16xf32>
    %43 = arith.mulf %41, %42 : vector<4x16xf32>
    %44 = arith.addf %38, %43 : vector<4x16xf32>
    %c0_26 = arith.constant 0 : index
    %c6 = arith.constant 6 : index
    %45 = vector.load %arg3[%c0_26, %c6] : memref<4x8xf32, #tpu.memory_space<vmem>>, vector<4x1xf32>
    %c2_27 = arith.constant 2 : index
    %c1_28 = arith.constant 1 : index
    %46 = vector.load %arg6[%c2_27, %c1_28] : memref<4x17xf32, #tpu.memory_space<vmem>>, vector<1x16xf32>
    %47 = vector.broadcast %45 : vector<4x1xf32> to vector<4x16xf32>
    %48 = vector.broadcast %46 : vector<1x16xf32> to vector<4x16xf32>
    %49 = arith.mulf %47, %48 : vector<4x16xf32>
    %50 = arith.addf %44, %49 : vector<4x16xf32>
    %c0_29 = arith.constant 0 : index
    %c7 = arith.constant 7 : index
    %51 = vector.load %arg3[%c0_29, %c7] : memref<4x8xf32, #tpu.memory_space<vmem>>, vector<4x1xf32>
    %c3_30 = arith.constant 3 : index
    %c1_31 = arith.constant 1 : index
    %52 = vector.load %arg6[%c3_30, %c1_31] : memref<4x17xf32, #tpu.memory_space<vmem>>, vector<1x16xf32>
    %53 = vector.broadcast %51 : vector<4x1xf32> to vector<4x16xf32>
    %54 = vector.broadcast %52 : vector<1x16xf32> to vector<4x16xf32>
    %55 = arith.mulf %53, %54 : vector<4x16xf32>
    %56 = arith.addf %50, %55 : vector<4x16xf32>
    %c0_32 = arith.constant 0 : index
    %c0_33 = arith.constant 0 : index
    %c0_34 = arith.constant 0 : index
    %57 = vector.load %arg5[%c0_32, %c0_33, %c0_34] : memref<1x4x16xf32, #tpu.memory_space<vmem>>, vector<1x4x16xf32>
    %58 = vector.shape_cast %57 : vector<1x4x16xf32> to vector<4x16xf32>
    %59 = vector.shape_cast %56 : vector<4x16xf32> to vector<1x4x16xf32>
    tpu.vector_store %arg5[%c0_32, %c0_33, %c0_34], %59 {strides = array<i32>} : memref<1x4x16xf32, #tpu.memory_space<vmem>>, vector<1x4x16xf32>,
    %c0_35 = arith.constant 0 : index
    %c16 = arith.constant 16 : index
    %60 = vector.load %arg6[%c0_35, %c16] : memref<4x17xf32, #tpu.memory_space<vmem>>, vector<4x1xf32>
    %c0_36 = arith.constant 0 : index
    %c0_37 = arith.constant 0 : index
    %61 = vector.load %arg6[%c0_36, %c0_37] : memref<4x17xf32, #tpu.memory_space<vmem>>, vector<4x1xf32>
    tpu.vector_store %arg6[%c0_36, %c0_37], %60 {strides = array<i32>} : memref<4x17xf32, #tpu.memory_space<vmem>>, vector<4x1xf32>,
    return
  }
  func.func @transform_0(%arg0: i32, %arg1: i32) -> (i32, i32, i32) {
    %c0_i32 = arith.constant 0 : i32
    %c0_i32_0 = arith.constant 0 : i32
    return %arg0, %c0_i32, %arg1 : i32, i32, i32
  }
  func.func @transform_1(%arg0: i32, %arg1: i32) -> (i32, i32) {
    %c0_i32 = arith.constant 0 : i32
    %c0_i32_0 = arith.constant 0 : i32
    %c0_i32_1 = arith.constant 0 : i32
    return %c0_i32, %c0_i32_0 : i32, i32
  }
  func.func @transform_2(%arg0: i32, %arg1: i32) -> (i32, i32) {
    %c0_i32 = arith.constant 0 : i32
    %c0_i32_0 = arith.constant 0 : i32
    %c0_i32_1 = arith.constant 0 : i32
    return %c0_i32, %c0_i32_0 : i32, i32
  }
  func.func @transform_3(%arg0: i32, %arg1: i32) -> (i32, i32, i32) {
    %c0_i32 = arith.constant 0 : i32
    %c0_i32_0 = arith.constant 0 : i32
    return %arg0, %c0_i32, %arg1 : i32, i32, i32
  }
}

</mosaic_0001>

<bundles_post_ra>
// kernel: tpu_custom_call.1
= control target key start
LH: loop header
LB: loop body
LE: loop exit
PB: predicated region body
PF: predicated region fallthrough
CT: control target
= control target key end

     0   :  { %8 = vsyncpa [#allocation4], 0  ;;  %s845_s0 = inlined_call_operand.hbm [shape: f32[2,4,16], index: 0, kind: input, shape index: {}]   ;;  %s846_s1 = inlined_call_operand.vmem [shape: f32[4,8], index: 1, kind: input, shape index: {}]   ;;  %s847_s2 = inlined_call_operand.vmem [shape: f32[4,1], index: 2, kind: input, shape index: {}]   ;;  %s848_s3 = inlined_call_operand.hbm [shape: f32[2,4,16], index: 3, kind: output, shape index: {}]  }
   0x1   :  { %10 = vsyncpa [#allocation4 + $0x1], 0 }
   0x2   :  { %11 = vsyncpa [#allocation5], 0 }
   0x3   :  { %13 = vsyncpa [#allocation5 + $0x1], 0  ;;  %s661_s12 = smov 0   ;;  %s663_s13 = smov 0  }
   0x4   :  { %s665_s14 = smov 0   ;;  %s667_s15 = smov 0  }
   0x5   :  { %s669_s16 = smov 0   ;;  %s671_s17 = smov 0  }
   0x6 LB: > { %s412_s18 = sadd.s32 4294967295, %s625_s17   ;;  %s413_s19 = sadd.s32 4294967294, %s625_s17   ;;  %s625_s17 = sphi %s671_s17, %s19_s17   ;;  %s621_s16 = sphi %s669_s16, %s864_s16   ;;  %s617_s15 = sphi %s667_s15, %s863_s15   ;;  %s613_s14 = sphi %s665_s14, %s862_s14   ;;  %s609_s13 = sphi %s663_s13, %s861_s13   ;;  %s605_s12 = sphi %s661_s12, %s860_s12  }
   0x7   : > { %s31_s20 = sadd.s32 1, %s621_s16  ;;  %s40_s21 = sadd.s32 1, %s613_s14 }
   0x8   : > { %p33_p0 = scmp.ge.s32.totalorder %s31_s20, 2  ;;  %p47_p1 = scmp.ne.s32.totalorder %s613_s14, %s609_s13 }
   0x9   : > { %p48_p2 = scmp.eq.s32.totalorder %s625_s17, 0  ;;  %p53_p3 = scmp.ne.s32.totalorder %s609_s13, %s605_s12 }
   0xa   : > { %s866_s20 = smov (%p33_p0, %s31_s20), 0  ;;  %p54_p5 = scmp.eq.s32.totalorder %s412_s18, 0 }
   0xb   : > { %p702_p4 = por %p48_p2, %p47_p1  ;;  %s35_s23 = ssub.s32 %s621_s16, %s866_s20 }
   0xc   : > { %p121_p6 = scmp.eq.s32.totalorder %s412_s18, 1  ;;  %p38_p7 = scmp.eq.s32.totalorder %s35_s23, 0 }
   0xd   : > { %p708_p8 = por %p54_p5, %p53_p3  ;;  %p127_p10 = scmp.eq.s32.totalorder %s413_s19, 1 }
   0xe   : > { %p712_p9 = por %p121_p6, %p47_p1  ;;  %p441_p13 = scmp.lt.s32.totalorder %s625_s17, 2 }
   0xf   : > { %s717_s26 = scalar_select %p38_p7, %s613_s14, %s40_s21  }
  0x10   : > { %s852_s25 = scalar_select %p712_p9, 1, 0 }
  0x11   : > { %p719_p11 = por %p127_p10, %p53_p3  ;;  %s153_s28 = sand.u32 1, %s613_s14  }
  0x12   : > { %s416_s29 = sshll.u32 %s153_s28, 2  ;;  %s417_s30 = sshll.u32 %s621_s16, 6 }
  0x13   : > { %s853_s27 = scalar_select %p719_p11, 1, 0 }
  0x14   : > { %s730_s6 = scalar_lea.hbm %s845_s0, %s417_s30  ;;  %s157_s7 = scalar_lea.vmem [#allocation3], %s416_s29 }
  0x15   : > { %s165_s8 = sshll.u32 %s157_s7, 4  ;;  %p736_p0 = pnand %p441_p13, %p702_p4  ;;  %s732_s8 = int_to_ptr.vmem [resolvable:$true] %s165_s8 }
  0x16   : > { %s154_s10 = scalar_lea.sflag [#allocation4], %s153_s28  ;;  %s513_s11 = scalar_lea.hbm %s730_s6, 64 }
  0x17   : > { %p514_p3 = scmp.ne.s32.totalorder %s730_s6, %s513_s11  ;;  %p515_p5 = pneg %p736_p0 }
  0x18   : > { %s518_s21 = scalar_lea.hbm %s845_s0, 128  ;;  %p519_p4 = scmp.lt.u32.totalorder %s730_s6, %s845_s0 }
  0x19   : > { %p516_p6 = pnand %p515_p5, %p514_p3  ;;  %p520_p10 = scmp.lt.u32.totalorder %s518_s21, %s513_s11 }
  0x1a   : > { %p522_p12 = scmp.lt.u32.totalorder %s513_s11, %s730_s6 }
  0x1b   : > { %p517_p7 = pneg %p516_p6  ;;  %p521_p13 = por %p520_p10, %p519_p4 }
  0x1d   : > { %p523_p1 = por %p522_p12, %p521_p13 }
  0x1f   : > { %p524_p2 = pnand %p523_p1, %p517_p7 }
  0x21   : > { %527 = shalt.err (!%p524_p2)
}
  0x22   : > { %s528_s28 = scalar_lea.vmem %s732_s8, 64  ;;  %s627_s29 = smov [#allocation3]  }
  0x23   : > { %p529_p3 = scmp.ne.s32.totalorder %s732_s8, %s528_s28  ;;  %s533_s30 = sshll.u32 %s627_s29, 4  ;;  %s534_s30 = int_to_ptr.vmem [resolvable:$false] %s533_s30 }
  0x24   : > { %s535_s4 = scalar_lea.vmem %s534_s30, 128  ;;  %p536_p9 = scmp.lt.s32.totalorder %s732_s8, %s534_s30 }
  0x25   : > { %p531_p6 = pnand %p529_p3, %p515_p5  ;;  %p537_p4 = scmp.lt.s32.totalorder %s535_s4, %s528_s28 }
  0x27   : > { %p532_p11 = pneg %p531_p6  ;;  %p538_p10 = por %p537_p4, %p536_p9 }
  0x29   : > { %p539_p12 = pnand %p538_p10, %p532_p11 }
  0x2b   : > { %542 = shalt.err (!%p539_p12)
}
  0x2c   : > { %436 = dma.hbm_to_vmem [thread:$0]  (!%p736_p0), %s730_s6, 64, %s732_s8, %s154_s10  }
  0x2d   : > { %p855_p1 = scmp.lt.s32.totalorder %s625_s17, 3  ;;  %p856_p2 = scmp.ge.s32.totalorder %s625_s17, 1 }
  0x2f   : > { %p171_p5 = pnand %p856_p2, %p855_p1 }
  0x30   : > { %s772_s5 = sand.u32 (!%p171_p5), 1, %s609_s13  }
  0x31   : > { %174 = sbr.rel (%p171_p5) target bundleno = 331 (0x14b), region = 32  ;;  %s419_s7 = sshll.u32 (!%p171_p5), %s772_s5, 2 }
  0x32   : > { %s177_s11 = scalar_lea.sflag (!%p171_p5), [#allocation4], %s772_s5  ;;  %s180_s9 = scalar_lea.vmem (!%p171_p5), [#allocation3], %s419_s7 }
  0x38   : > { %596 = dma.done.wait (%p708_p8), %s177_s11, 64  }
  0x39   : > { %598 = vsyncadd (%p708_p8), %s177_s11, 4294967232  ;;  %v628_v0 = vmov 5   ;;  %v629_v1 = vmov 4   ;;  %vm207_vm0 = vcmask 3072   ;;  %v630_v2 = vmov 0.0   ;;  %s631_s10 = smov 1  }
  0x3a   : > { %504 = vset.pattern.permute.xlu1 %v628_v0  ;;  %503 = vset.pattern.permute.xlu0 %v629_v1  ;;  %208 = vst.msk [vmem:[#allocation2] sm:$0xf] %vm207_vm0, %v630_v2  ;;  %v222_v3 = vld [vmem:[%s846_s1] sm:$0xf]  ;;  %v209_v4 = vld [vmem:[%s180_s9] sm:$0xf] }
  0x3b   : > { %279 = vperm.xlu1 %504, %v222_v3   ;;  %211 = vrot.lane.b32.xlu0 %v209_v4, %s631_s10  ;;  %v632_v5 = vmov 6   ;;  %v633_v6 = vmov 0   ;;  %v634_v7 = vmov 7   ;;  %v216_v8 = vld [vmem:[%s847_s2] sm:$0xf]  ;;  %v635_v9 = vmov 2  }
  0x3c   : > { %v636_v10 = vmov 1   ;;  %v637_v11 = vmov 3   ;;  %vm214_vm1 = vcmask 134152   ;;  %s638_s19 = smov 127   ;;  %s639_s21 = smov 112   ;;  %vm308_vm2 = vcmask 125952  }
  0x3d   : > { %s426_s22 = sshll.u32 %s617_s15, 6  ;;  %s202_s23 = scalar_lea.vmem [#allocation6], %s419_s7 }
  0x3e   : > { %s332_s28 = sshll.u32 %s202_s23, 4  ;;  %s795_s4 = scalar_lea.hbm %s848_s3, %s426_s22  ;;  %s797_s28 = int_to_ptr.vmem [resolvable:$true] %s332_s28 }
  0x3f   : > { %505 = vset.pattern.permute.xlu1 %v632_v5  ;;  %269 = vperm.xlu0 %503, %v222_v3   ;;  %s318_s15 = scalar_lea.sflag [#allocation5], %s772_s5  ;;  %s543_s7 = scalar_lea.vmem %s797_s28, 64 }
  0x40   : > { %289 = vperm.xlu1 %505, %v222_v3   ;;  %p544_p8 = scmp.ne.s32.totalorder %s797_s28, %s543_s7  ;;  %p857_p9 = scmp.ne.s32.totalorder %s852_s25, 0 }
  0x41   : > { %s640_s11 = smov [#allocation6]  }
  0x42   : > { %p545_p11 = pnand %p544_p8, %p857_p9  ;;  %s547_s9 = sshll.u32 %s640_s11, 4  ;;  %s548_s9 = int_to_ptr.vmem [resolvable:$false] %s547_s9 }
  0x43   : > { %507 = vset.pattern.permute.xlu0 %v633_v6  ;;  %s549_s6 = scalar_lea.vmem %s548_s9, 128  ;;  %p550_p7 = scmp.lt.s32.totalorder %s797_s28, %s548_s9 }
  0x44   : > { %506 = vset.pattern.permute.xlu1 %v634_v7  ;;  %226 = vperm.xlu0 %507, %v222_v3   ;;  %p546_p0 = pneg %p545_p11  ;;  %p551_p13 = scmp.lt.s32.totalorder %s549_s6, %s543_s7 }
  0x45   : > { %299 = vperm.xlu1 %506, %v222_v3  }
  0x46   : > { %p552_p3 = por %p551_p13, %p550_p7 }
  0x48   : > { %510 = vset.pattern.permute.xlu0 %v635_v9  ;;  %p553_p6 = pnand %p552_p3, %p546_p0 }
  0x49   : > { %508 = vset.pattern.permute.xlu1 %v633_v6  ;;  %248 = vperm.xlu0 %510, %v222_v3  }
  0x4a   : > { %219 = vperm.xlu1 %508, %v216_v8  }
  0x4d   : > { %512 = vset.pattern.permute.xlu0 %v634_v7 }
  0x4e   : > { %509 = vset.pattern.permute.xlu1 %v636_v10 }
  0x4f   : > { %237 = vperm.xlu1 %509, %v222_v3  }
  0x53   : > { %511 = vset.pattern.permute.xlu1 %v637_v11 }
  0x54   : > { %259 = vperm.xlu1 %511, %v222_v3  }
  0xad   : > { %v212_v12 = vpop.permute.xlu0 %211 }
  0xae   : > { %215 = vst.msk [vmem:[#allocation2] sm:$0xf] %vm214_vm1, %v212_v12 }
  0xb5   : > { %v422_v14 = vld [vmem:[#allocation2 + $0x1] ss:$0 sm:$0xff]  ;;  %v421_v17 = vld [vmem:[#allocation2] ss:$0 sm:$0xff]  ;;  %v423_v20 = vld [vmem:[#allocation2 + $0x2] ss:$0 sm:$0xff] }
  0xb6   : > { %v424_v23 = vld [vmem:[#allocation2 + $0x3] ss:$0 sm:$0xff] }
  0xb7   : > { %v310_v25 = vld [vmem:[#allocation2] sm:$0xf] }
  0xba   : > { %v280_v13 = vpop.permute.xlu1 %279 }
  0xbb   : > { %v282_v15 = vmul.f32 %v422_v14, %v280_v13 }
  0xbd   : > { %284 = vrot.lane.b32.xlu0 %v282_v15, %s638_s19 }
  0xbe   : > { %v270_v16 = vpop.permute.xlu0 %269 }
  0xbf   : > { %v272_v18 = vmul.f32 %v421_v17, %v270_v16  ;;  %v290_v19 = vpop.permute.xlu1 %289 }
  0xc0   : > { %v292_v21 = vmul.f32 %v423_v20, %v290_v19 }
  0xc1   : > { %274 = vrot.lane.b32.xlu1 %v272_v18, %s638_s19 }
  0xc3   : > { %v227_v27 = vpop.permute.xlu0 %226 }
  0xc4   : > { %v300_v22 = vpop.permute.xlu1 %299  ;;  %v233_v29 = vmul.f32 %v421_v17, %v227_v27 }
  0xc5   : > { %v302_v24 = vmul.f32 %v424_v23, %v300_v22  ;;  %294 = vrot.lane.b32.xlu1 %v292_v21, %s638_s19 }
  0xc7   : > { %304 = vrot.lane.b32.xlu0 %v302_v24, %s638_s19 }
  0xc8   : > { %v249_v32 = vpop.permute.xlu0 %248 }
  0xc9   : > { %312 = vrot.lane.b32.xlu1 %v310_v25, %s639_s21  ;;  %v220_v26 = vpop.permute.xlu1 %219  ;;  %v255_v35 = vmul.f32 %v423_v20, %v249_v32 }
  0xca   : > { %v234_v31 = vadd.f32 %v233_v29, %v220_v26 }
  0xce   : > { %v238_v28 = vpop.permute.xlu1 %237 }
  0xcf   : > { %v244_v30 = vmul.f32 %v422_v14, %v238_v28 }
  0xd1   : > { %v245_v33 = vadd.f32 %v244_v30, %v234_v31 }
  0xd3   : > { %v260_v34 = vpop.permute.xlu1 %259  ;;  %v256_v37 = vadd.f32 %v255_v35, %v245_v33 }
  0xd4   : > { %v266_v36 = vmul.f32 %v424_v23, %v260_v34 }
  0xd6   : > { %v267_v38 = vadd.f32 %v266_v36, %v256_v37 }
 0x12f   : > { %v285_v41 = vpop.permute.xlu0 %284 }
 0x133   : > { %v275_v39 = vpop.permute.xlu1 %274 }
 0x134   : > { %v277_v40 = vadd.f32 %v275_v39, %v267_v38 }
 0x136   : > { %v287_v42 = vadd.f32 %v285_v41, %v277_v40 }
 0x137   : > { %v295_v43 = vpop.permute.xlu1 %294 }
 0x138   : > { %v297_v44 = vadd.f32 %v295_v43, %v287_v42 }
 0x139   : > { %v305_v45 = vpop.permute.xlu0 %304 }
 0x13a   : > { %v307_v46 = vadd.f32 %v305_v45, %v297_v44 }
 0x13b   : > { %v313_v47 = vpop.permute.xlu1 %312 }
 0x13c   : > { %316 = vst.msk [vmem:[#allocation2] sm:$0xf] %vm207_vm0, %v313_v47 }
 0x13d   : > { %309 = vst.msk [vmem:[%s202_s23] sm:$0xf] %vm308_vm2, %v307_v46 }
 0x13e   : > { %556 = shalt.err (!%p553_p6)
}
 0x13f   : > { %s557_s5 = scalar_lea.hbm %s795_s4, 64  ;;  %s561_s24 = scalar_lea.hbm %s848_s3, 128 }
 0x140   : > { %p558_p4 = scmp.ne.s32.totalorder %s795_s4, %s557_s5  ;;  %p562_p1 = scmp.lt.u32.totalorder %s795_s4, %s848_s3 }
 0x141   : > { %p563_p2 = scmp.lt.u32.totalorder %s561_s24, %s557_s5  ;;  %p565_p8 = scmp.lt.u32.totalorder %s557_s5, %s795_s4 }
 0x142   : > { %p559_p10 = pnand %p558_p4, %p857_p9 }
 0x143   : > { %p564_p5 = por %p563_p2, %p562_p1 }
 0x144   : > { %p560_p12 = pneg %p559_p10 }
 0x145   : > { %p566_p11 = por %p565_p8, %p564_p5 }
 0x147   : > { %p567_p0 = pnand %p566_p11, %p560_p12 }
 0x149   : > { %570 = shalt.err (!%p567_p0)
}
 0x14a   : > { %431 = dma.vmem_to_hbm [thread:$0]  (%p857_p9), %s797_s28, 64, %s795_s4, %s318_s15  }
 0x14b PF: > { %s344_s21 = sand.u32 1, %s605_s12   ;;  %p858_p7 = scmp.ne.s32.totalorder %s853_s27, 0 }
 0x14c   : > { %p859_p13 = scmp.ge.s32.totalorder %s625_s17, 2  ;;  %s345_s22 = scalar_lea.sflag [#allocation5], %s344_s21 }
 0x14e   : > { %p438_p3 = pnand %p859_p13, %p858_p7 }
 0x150   : > { %600 = dma.done.wait (!%p438_p3), %s345_s22, 64  }
 0x151   : > { %602 = vsyncadd (!%p438_p3), %s345_s22, 4294967232  ;;  %s19_s17 = sadd.s32 1, %s625_s17   ;;  %s860_s12 = smov %s609_s13 }
 0x152   : > { %p16_p6 = scmp.ge.s32.totalorder %s19_s17, 4   ;;  %s861_s13 = smov %s613_s14 }
 0x153   : > { %s862_s14 = smov %s717_s26  ;;  %s863_s15 = smov %s621_s16 }
 0x154   : > { %s864_s16 = smov %s866_s20  ;;  %18 = sbr.rel (!%p16_p6) target bundleno = 6 (0x6), region = 81 }
 0x15b   :  { %350 = vsyncpa [#allocation4], 1 }
 0x15c   :  { %352 = vsyncpa [#allocation4 + $0x1], 1 }
 0x15d   :  { %353 = vsyncpa [#allocation5], 1 }
 0x15e   :  { %355 = vsyncpa [#allocation5 + $0x1], 1 }

</bundles_post_ra>
